<compile_context>
chip_gen: v5e
topology: v5e:2x2
jax: 0.10.0
libtpu: 0.0.40
codegen_flags: <defaults>
</compile_context>

<pallas_src>
import functools

import jax
import jax.numpy as jnp
from jax.experimental import pallas as pl
from jax.experimental.pallas import tpu as pltpu

_LANES = 128


def _attention_head_kernel(xq_ref, xk_ref, wq_ref, bq_ref, wkv_ref, bkv_ref,
                           o_ref,
                           q_sc, m_sc, l_sc, acc_sc, k_cache, v_cache,
                           *, head_dim):
    # xq_ref: (tq, E) f32     query-row slab of x
    # xk_ref: (tk, E) f32     key/value-row slab of x (only read while qi == 0)
    # wq_ref: (E, Hp) cdt, bq_ref: (1, Hp) f32
    # wkv_ref: (E, 2Hp) cdt = [Wk | Wv], bkv_ref: (1, 2Hp) f32
    # o_ref: (tq, Hp)
    # scratch: q_sc (tq,Hp) cdt, m_sc/l_sc (tq,1) f32, acc_sc (tq,Hp) f32,
    #          k_cache/v_cache (n_k, tk, Hp) cdt  (persist across grid steps)
    compute_dtype = q_sc.dtype
    tq, hp = q_sc.shape
    tk = k_cache.shape[1]

    qi = pl.program_id(1)
    ki = pl.program_id(2)
    n_k = pl.num_programs(2)
    q_start = qi * tq
    k_start = ki * tk

    # ---- K/V projection cache fill: once per batch row (review #2) ----------
    # Fills tile `ki` of the cache on every ki step of qi == 0 (including tiles
    # whose attention compute is causally skipped — later query tiles need them).
    @pl.when(qi == 0)
    def _fill_kv_cache():
        kv = jnp.dot(xk_ref[...].astype(compute_dtype), wkv_ref[...],
                     preferred_element_type=jnp.float32) + bkv_ref[0]
        kv = kv.astype(compute_dtype)
        k_cache[ki] = kv[:, :hp]
        v_cache[ki] = kv[:, hp:]

    # ---- per-(batch, query-tile) init: hoisted, pre-scaled Q projection -----
    @pl.when(ki == 0)
    def _init():
        q = jnp.dot(xq_ref[...].astype(compute_dtype), wq_ref[...],
                    preferred_element_type=jnp.float32) + bq_ref[0]
        # fold 1/sqrt(H) into q once (tq*Hp muls) instead of scaling (tq,tk)
        q_sc[...] = (q * (1.0 / jnp.sqrt(jnp.float32(head_dim)))
                     ).astype(compute_dtype)
        m_sc[...] = jnp.full_like(m_sc, -jnp.inf)
        l_sc[...] = jnp.zeros_like(l_sc)
        acc_sc[...] = jnp.zeros_like(acc_sc)

    def _flash_update(apply_mask):
        k = k_cache[ki]                                     # (tk, Hp)
        v = v_cache[ki]                                     # (tk, Hp)
        s = jax.lax.dot_general(                            # (tq, tk) f32
            q_sc[...], k,
            dimension_numbers=(((1,), (1,)), ((), ())),
            preferred_element_type=jnp.float32)
        if apply_mask:  # only compiled into the diagonal-straddling branch (#6)
            row = q_start + jax.lax.broadcasted_iota(jnp.int32, (tq, tk), 0)
            col = k_start + jax.lax.broadcasted_iota(jnp.int32, (tq, tk), 1)
            s = jnp.where(col <= row, s, -jnp.inf)
        m_prev = m_sc[...]
        m_new = jnp.maximum(m_prev, jnp.max(s, axis=-1, keepdims=True))
        alpha = jnp.exp(m_prev - m_new)
        p = jnp.exp(s - m_new)
        l_sc[...] = alpha * l_sc[...] + jnp.sum(p, axis=-1, keepdims=True)
        acc_sc[...] = alpha * acc_sc[...] + jnp.dot(
            p.astype(compute_dtype), v, preferred_element_type=jnp.float32)
        m_sc[...] = m_new

    # ---- causal tile classification (review #6) ------------------------------
    fully_visible = (k_start + (tk - 1)) <= q_start
    fully_masked = k_start > (q_start + (tq - 1))
    straddling = jnp.logical_and(jnp.logical_not(fully_visible),
                                 jnp.logical_not(fully_masked))

    @pl.when(fully_visible)
    def _():
        _flash_update(apply_mask=False)

    @pl.when(straddling)
    def _():
        _flash_update(apply_mask=True)

    # ---- finalize on the last KV step of this query tile --------------------
    @pl.when(ki == n_k - 1)
    def _finalize():
        inv_l = pl.reciprocal(l_sc[...], approx=True)   # EUP vrcp, epilogue only
        o_ref[...] = (acc_sc[...] * inv_l).astype(o_ref.dtype)


def _pick_tile(t, target):
    """Largest tile <= target (from a power-of-two ladder) dividing t, else t."""
    if t <= target:
        return t
    for cand in (target, 512, 256, 128, 64, 32, 16, 8):
        if cand <= target and t % cand == 0:
            return cand
    return t


def attention_head(x, wq, bq, wk, bk, wv, bv, *, tq=None, tk=None,
                   compute_dtype=jnp.bfloat16):
    """Causal single-head attention with fused projections + flash softmax.

    x: (B, T, E); wq/wk/wv: (E, H) (PyTorch weight.T); bq/bk/bv: (H,).
    compute_dtype: dtype of MXU operands (bfloat16 recommended on v6e/v7x;
      pass jnp.float32 to match the f32 reference bit-closely).
    """
    B, T, E = x.shape
    H = wq.shape[1]

    # Lane-dense head dim (review #1): pad H up to a multiple of 128.
    Hp = -(-H // _LANES) * _LANES
    pad = Hp - H

    # Bigger default tiles (review #3).
    if tq is None:
        tq = _pick_tile(T, 256)
    if tk is None:
        tk = _pick_tile(T, 512)
    assert T % tq == 0 and T % tk == 0, "sequence length must divide the tiles"
    n_q, n_k = T // tq, T // tk

    # Padded + fused parameters. Weights pre-cast to compute_dtype (review #4/#5:
    # bf16 only at MXU operand boundaries); biases stay f32 (added post-matmul
    # on the f32 accumulation).
    f32 = jnp.float32
    wq_p = jnp.pad(wq, ((0, 0), (0, pad))).astype(compute_dtype)
    w_kv = jnp.concatenate(
        [jnp.pad(wk, ((0, 0), (0, pad))), jnp.pad(wv, ((0, 0), (0, pad)))],
        axis=1).astype(compute_dtype)
    bq_p = jnp.pad(bq.astype(f32), (0, pad)).reshape(1, Hp)
    b_kv = jnp.concatenate(
        [jnp.pad(bk.astype(f32), (0, pad)), jnp.pad(bv.astype(f32), (0, pad))]
    ).reshape(1, 2 * Hp)

    const = lambda b, qi, ki: (0, 0)
    # xk is only consumed while qi == 0 (cache fill). For qi > 0 clamp the block
    # index to a constant so the pipeline elides the otherwise-wasted DMA (#7).
    xk_map = lambda b, qi, ki: (b, jnp.minimum(ki + qi * n_k, n_k - 1), 0)

    out = pl.pallas_call(
        functools.partial(_attention_head_kernel, head_dim=H),
        out_shape=jax.ShapeDtypeStruct((B, T, Hp), x.dtype),
        grid_spec=pltpu.PrefetchScalarGridSpec(
            num_scalar_prefetch=0,
            grid=(B, n_q, n_k),
            in_specs=[
                pl.BlockSpec((None, tq, E), lambda b, qi, ki: (b, qi, 0)),  # x: q rows
                pl.BlockSpec((None, tk, E), xk_map),                        # x: kv rows
                pl.BlockSpec((E, Hp), const),        # Wq  (padded, compute_dtype)
                pl.BlockSpec((1, Hp), const),        # bq  (padded, f32)
                pl.BlockSpec((E, 2 * Hp), const),    # [Wk | Wv] (padded)
                pl.BlockSpec((1, 2 * Hp), const),    # [bk | bv] (padded)
            ],
            out_specs=pl.BlockSpec((None, tq, Hp), lambda b, qi, ki: (b, qi, 0)),
            scratch_shapes=[
                pltpu.VMEM((tq, Hp), compute_dtype),       # pre-scaled Q tile
                pltpu.VMEM((tq, 1), jnp.float32),          # running max m
                pltpu.VMEM((tq, 1), jnp.float32),          # running denom l
                pltpu.VMEM((tq, Hp), jnp.float32),         # output accumulator
                pltpu.VMEM((n_k, tk, Hp), compute_dtype),  # K cache (whole T row)
                pltpu.VMEM((n_k, tk, Hp), compute_dtype),  # V cache (whole T row)
            ],
        ),
        # The persistent K/V cache is filled at qi == 0 and reused for qi > 0,
        # so only the batch axis may be split across cores (review caveat).
        compiler_params=pltpu.CompilerParams(
            dimension_semantics=("parallel", "arbitrary", "arbitrary")),
    )(x, x, wq_p, bq_p, w_kv, b_kv)

    return out[..., :H]   # drop lane padding (layout plumbing, zero columns)


def reference(x, wq, bq, wk, bk, wv, bv):
    H = wq.shape[1]
    T = x.shape[1]
    q = x @ wq + bq
    k = x @ wk + bk
    v = x @ wv + bv
    scores = (q @ jnp.swapaxes(k, -2, -1)) / jnp.sqrt(jnp.float32(H))
    mask = jnp.tril(jnp.ones((T, T), dtype=jnp.float32))
    scores = jnp.where(mask == 0, -jnp.inf, scores)
    w = jax.nn.softmax(scores, axis=-1)
    return w @ v


def _make_params(key, E, H):
    kq, kbq, kk, kbk, kv, kbv = jax.random.split(key, 6)
    bound = 1.0 / jnp.sqrt(jnp.float32(E))
    u = lambda k, shape: jax.random.uniform(
        k, shape, minval=-bound, maxval=bound, dtype=jnp.float32)
    return (u(kq, (E, H)), u(kbq, (H,)), u(kk, (E, H)), u(kbk, (H,)),
            u(kv, (E, H)), u(kbv, (H,)))


if __name__ == "__main__":
    E, H = 32, 16
    key = jax.random.PRNGKey(0)
    kp, kx1, kx2 = jax.random.split(key, 3)
    wq, bq, wk, bk, wv, bv = _make_params(kp, E, H)

    # --- Test 1: module-sized shapes (B=2, T=8): single tile / whole sequence.
    x1 = jax.random.normal(kx1, (2, 8, E), dtype=jnp.float32)
    ref1 = reference(x1, wq, bq, wk, bk, wv, bv)
    out1_f32 = jax.block_until_ready(
        attention_head(x1, wq, bq, wk, bk, wv, bv, compute_dtype=jnp.float32))
    out1_bf16 = jax.block_until_ready(
        attention_head(x1, wq, bq, wk, bk, wv, bv))   # bf16 MXU operands (default)
    assert out1_f32.shape == (2, 8, H)
    # f32 path: only approximation is the EUP vrcp softmax normalizer (~2^-12).
    assert jnp.allclose(out1_f32, ref1, atol=2e-3, rtol=2e-3)
    # bf16-operand path: matmuls accumulate in f32; ~1e-3-level relative error.
    assert jnp.allclose(out1_bf16, ref1, atol=2e-2, rtol=2e-2)

    # --- Test 2: multi-tile path (flash loop, KV-cache reuse across query
    #     tiles, causal tile skip, clamped xk DMA): B=2, T=256, 64x64 tiles.
    x2 = jax.random.normal(kx2, (2, 256, E), dtype=jnp.float32)
    ref2 = reference(x2, wq, bq, wk, bk, wv, bv)
    out2_f32 = jax.block_until_ready(
        attention_head(x2, wq, bq, wk, bk, wv, bv, tq=64, tk=64,
                       compute_dtype=jnp.float32))
    out2_bf16 = jax.block_until_ready(
        attention_head(x2, wq, bq, wk, bk, wv, bv, tq=64, tk=64))
    assert out2_f32.shape == (2, 256, H)
    assert jnp.allclose(out2_f32, ref2, atol=2e-3, rtol=2e-3)
    assert jnp.allclose(out2_bf16, ref2, atol=2e-2, rtol=2e-2)

    print("KERNEL_OK")
</pallas_src>

<mosaic_0001>
module attributes {stable_mosaic.version = 11 : i64} {
  func.func @_attention_head_kernel(%arg0: i32, %arg1: i32, %arg2: i32, %arg3: memref<1x8x32xf32, #tpu.memory_space<vmem>>, %arg4: memref<1x8x32xf32, #tpu.memory_space<vmem>>, %arg5: memref<32x128xf32, #tpu.memory_space<vmem>>, %arg6: memref<1x128xf32, #tpu.memory_space<vmem>>, %arg7: memref<32x256xf32, #tpu.memory_space<vmem>>, %arg8: memref<1x256xf32, #tpu.memory_space<vmem>>, %arg9: memref<1x8x128xf32, #tpu.memory_space<vmem>>, %arg10: memref<8x128xf32, #tpu.memory_space<vmem>>, %arg11: memref<8x1xf32, #tpu.memory_space<vmem>>, %arg12: memref<8x1xf32, #tpu.memory_space<vmem>>, %arg13: memref<8x128xf32, #tpu.memory_space<vmem>>, %arg14: memref<1x8x128xf32, #tpu.memory_space<vmem>>, %arg15: memref<1x8x128xf32, #tpu.memory_space<vmem>>) attributes {dimension_semantics = [#tpu.dimension_semantics<parallel>, #tpu.dimension_semantics<arbitrary>, #tpu.dimension_semantics<arbitrary>], iteration_bounds = array<i64: 2, 1, 1>, scalar_prefetch = 0 : i64, scratch_operands = 6 : i64, tpu.core_type = #tpu.core_type<tc>, window_params = [{transform_indices = @transform_0, window_bounds = array<i64: 1, 8, 32>}, {transform_indices = @transform_1, window_bounds = array<i64: 1, 8, 32>}, {pipeline_mode = #tpu.pipeline_mode<synchronous>, transform_indices = @transform_2, window_bounds = array<i64: 32, 128>}, {pipeline_mode = #tpu.pipeline_mode<synchronous>, transform_indices = @transform_3, window_bounds = array<i64: 1, 128>}, {pipeline_mode = #tpu.pipeline_mode<synchronous>, transform_indices = @transform_4, window_bounds = array<i64: 32, 256>}, {pipeline_mode = #tpu.pipeline_mode<synchronous>, transform_indices = @transform_5, window_bounds = array<i64: 1, 256>}, {transform_indices = @transform_6, window_bounds = array<i64: 1, 8, 128>}]} {
    %c8_i32 = arith.constant 8 : i32
    %0 = arith.muli %arg1, %c8_i32 : i32
    %c8_i32_0 = arith.constant 8 : i32
    %1 = arith.muli %arg2, %c8_i32_0 : i32
    %c0_i32 = arith.constant 0 : i32
    %2 = arith.cmpi eq, %arg1, %c0_i32 : i32
    %3 = arith.extui %2 : i1 to i32
    %c0_i32_1 = arith.constant 0 : i32
    %4 = arith.cmpi ne, %3, %c0_i32_1 : i32
    scf.if %4 {
      %c0 = arith.constant 0 : index
      %c0_10 = arith.constant 0 : index
      %c0_11 = arith.constant 0 : index
      %22 = vector.load %arg4[%c0, %c0_10, %c0_11] : memref<1x8x32xf32, #tpu.memory_space<vmem>>, vector<1x8x32xf32>
      %23 = vector.shape_cast %22 : vector<1x8x32xf32> to vector<8x32xf32>
      %c0_12 = arith.constant 0 : index
      %c0_13 = arith.constant 0 : index
      %24 = vector.load %arg7[%c0_12, %c0_13] : memref<32x256xf32, #tpu.memory_space<vmem>>, vector<32x256xf32>
      %cst = arith.constant dense<0.000000e+00> : vector<8x256xf32>
      %25 = tpu.matmul %23, %24, %cst {dimension_numbers = #tpu.dot_dimension_numbers<[1], [0], [0], [1], [0, 0, 1, 1], [], []>} : vector<8x32xf32>, vector<32x256xf32>, vector<8x256xf32> -> vector<8x256xf32>
      %c0_14 = arith.constant 0 : index
      %c0_15 = arith.constant 0 : index
      %26 = vector.load %arg8[%c0_14, %c0_15] : memref<1x256xf32, #tpu.memory_space<vmem>>, vector<1x256xf32>
      %27 = vector.shape_cast %26 : vector<1x256xf32> to vector<256xf32>
      %28 = vector.shape_cast %27 : vector<256xf32> to vector<1x256xf32>
      %29 = vector.broadcast %28 : vector<1x256xf32> to vector<8x256xf32>
      %30 = arith.addf %25, %29 : vector<8x256xf32>
      %31 = vector.extract_strided_slice %30 {offsets = [0, 0], sizes = [8, 128], strides = [1, 1]} : vector<8x256xf32> to vector<8x128xf32>
      %32 = arith.index_cast %arg2 : i32 to index
      %c0_16 = arith.constant 0 : index
      %c0_17 = arith.constant 0 : index
      %33 = vector.load %arg14[%32, %c0_16, %c0_17] : memref<1x8x128xf32, #tpu.memory_space<vmem>>, vector<1x8x128xf32>
      %34 = vector.shape_cast %33 : vector<1x8x128xf32> to vector<8x128xf32>
      %35 = vector.shape_cast %31 : vector<8x128xf32> to vector<1x8x128xf32>
      tpu.vector_store %arg14[%32, %c0_16, %c0_17], %35 {strides = array<i32>} : memref<1x8x128xf32, #tpu.memory_space<vmem>>, vector<1x8x128xf32>,
      %36 = vector.extract_strided_slice %30 {offsets = [0, 128], sizes = [8, 128], strides = [1, 1]} : vector<8x256xf32> to vector<8x128xf32>
      %37 = arith.index_cast %arg2 : i32 to index
      %c0_18 = arith.constant 0 : index
      %c0_19 = arith.constant 0 : index
      %38 = vector.load %arg15[%37, %c0_18, %c0_19] : memref<1x8x128xf32, #tpu.memory_space<vmem>>, vector<1x8x128xf32>
      %39 = vector.shape_cast %38 : vector<1x8x128xf32> to vector<8x128xf32>
      %40 = vector.shape_cast %36 : vector<8x128xf32> to vector<1x8x128xf32>
      tpu.vector_store %arg15[%37, %c0_18, %c0_19], %40 {strides = array<i32>} : memref<1x8x128xf32, #tpu.memory_space<vmem>>, vector<1x8x128xf32>,
    } else {
    }
    %c0_i32_2 = arith.constant 0 : i32
    %5 = arith.cmpi eq, %arg2, %c0_i32_2 : i32
    %6 = arith.extui %5 : i1 to i32
    %c0_i32_3 = arith.constant 0 : i32
    %7 = arith.cmpi ne, %6, %c0_i32_3 : i32
    scf.if %7 {
      %c0 = arith.constant 0 : index
      %c0_10 = arith.constant 0 : index
      %c0_11 = arith.constant 0 : index
      %22 = vector.load %arg3[%c0, %c0_10, %c0_11] : memref<1x8x32xf32, #tpu.memory_space<vmem>>, vector<1x8x32xf32>
      %23 = vector.shape_cast %22 : vector<1x8x32xf32> to vector<8x32xf32>
      %c0_12 = arith.constant 0 : index
      %c0_13 = arith.constant 0 : index
      %24 = vector.load %arg5[%c0_12, %c0_13] : memref<32x128xf32, #tpu.memory_space<vmem>>, vector<32x128xf32>
      %cst = arith.constant dense<0.000000e+00> : vector<8x128xf32>
      %25 = tpu.matmul %23, %24, %cst {dimension_numbers = #tpu.dot_dimension_numbers<[1], [0], [0], [1], [0, 0, 1, 1], [], []>} : vector<8x32xf32>, vector<32x128xf32>, vector<8x128xf32> -> vector<8x128xf32>
      %c0_14 = arith.constant 0 : index
      %c0_15 = arith.constant 0 : index
      %26 = vector.load %arg6[%c0_14, %c0_15] : memref<1x128xf32, #tpu.memory_space<vmem>>, vector<1x128xf32>
      %27 = vector.shape_cast %26 : vector<1x128xf32> to vector<128xf32>
      %28 = vector.shape_cast %27 : vector<128xf32> to vector<1x128xf32>
      %29 = vector.broadcast %28 : vector<1x128xf32> to vector<8x128xf32>
      %30 = arith.addf %25, %29 : vector<8x128xf32>
      %cst_16 = arith.constant 1.600000e+01 : f32
      %31 = math.sqrt %cst_16 : f32
      %cst_17 = arith.constant 1.000000e+00 : f32
      %32 = arith.divf %cst_17, %31 : f32
      %33 = vector.broadcast %32 : f32 to vector<8x128xf32>
      %34 = arith.mulf %30, %33 : vector<8x128xf32>
      %c0_18 = arith.constant 0 : index
      %c0_19 = arith.constant 0 : index
      %35 = vector.load %arg10[%c0_18, %c0_19] : memref<8x128xf32, #tpu.memory_space<vmem>>, vector<8x128xf32>
      tpu.vector_store %arg10[%c0_18, %c0_19], %34 {strides = array<i32>} : memref<8x128xf32, #tpu.memory_space<vmem>>, vector<8x128xf32>,
      %cst_20 = arith.constant 0xFF800000 : f32
      %36 = vector.broadcast %cst_20 : f32 to vector<8x1xf32>
      %c0_21 = arith.constant 0 : index
      %c0_22 = arith.constant 0 : index
      %37 = vector.load %arg11[%c0_21, %c0_22] : memref<8x1xf32, #tpu.memory_space<vmem>>, vector<8x1xf32>
      tpu.vector_store %arg11[%c0_21, %c0_22], %36 {strides = array<i32>} : memref<8x1xf32, #tpu.memory_space<vmem>>, vector<8x1xf32>,
      %cst_23 = arith.constant 0.000000e+00 : f32
      %38 = vector.broadcast %cst_23 : f32 to vector<8x1xf32>
      %c0_24 = arith.constant 0 : index
      %c0_25 = arith.constant 0 : index
      %39 = vector.load %arg12[%c0_24, %c0_25] : memref<8x1xf32, #tpu.memory_space<vmem>>, vector<8x1xf32>
      tpu.vector_store %arg12[%c0_24, %c0_25], %38 {strides = array<i32>} : memref<8x1xf32, #tpu.memory_space<vmem>>, vector<8x1xf32>,
      %cst_26 = arith.constant 0.000000e+00 : f32
      %40 = vector.broadcast %cst_26 : f32 to vector<8x128xf32>
      %c0_27 = arith.constant 0 : index
      %c0_28 = arith.constant 0 : index
      %41 = vector.load %arg13[%c0_27, %c0_28] : memref<8x128xf32, #tpu.memory_space<vmem>>, vector<8x128xf32>
      tpu.vector_store %arg13[%c0_27, %c0_28], %40 {strides = array<i32>} : memref<8x128xf32, #tpu.memory_space<vmem>>, vector<8x128xf32>,
    } else {
    }
    %c7_i32 = arith.constant 7 : i32
    %8 = arith.addi %1, %c7_i32 : i32
    %9 = arith.cmpi sle, %8, %0 : i32
    %c7_i32_4 = arith.constant 7 : i32
    %10 = arith.addi %0, %c7_i32_4 : i32
    %11 = arith.cmpi sgt, %1, %10 : i32
    %true = arith.constant true
    %12 = arith.xori %9, %true : i1
    %true_5 = arith.constant true
    %13 = arith.xori %11, %true_5 : i1
    %14 = arith.andi %12, %13 : i1
    %15 = arith.extui %9 : i1 to i32
    %c0_i32_6 = arith.constant 0 : i32
    %16 = arith.cmpi ne, %15, %c0_i32_6 : i32
    scf.if %16 {
      %22 = arith.index_cast %arg2 : i32 to index
      %c0 = arith.constant 0 : index
      %c0_10 = arith.constant 0 : index
      %23 = vector.load %arg14[%22, %c0, %c0_10] : memref<1x8x128xf32, #tpu.memory_space<vmem>>, vector<1x8x128xf32>
      %24 = vector.shape_cast %23 : vector<1x8x128xf32> to vector<8x128xf32>
      %25 = arith.index_cast %arg2 : i32 to index
      %c0_11 = arith.constant 0 : index
      %c0_12 = arith.constant 0 : index
      %26 = vector.load %arg15[%25, %c0_11, %c0_12] : memref<1x8x128xf32, #tpu.memory_space<vmem>>, vector<1x8x128xf32>
      %27 = vector.shape_cast %26 : vector<1x8x128xf32> to vector<8x128xf32>
      %c0_13 = arith.constant 0 : index
      %c0_14 = arith.constant 0 : index
      %28 = vector.load %arg10[%c0_13, %c0_14] : memref<8x128xf32, #tpu.memory_space<vmem>>, vector<8x128xf32>
      %cst = arith.constant dense<0.000000e+00> : vector<8x8xf32>
      %29 = tpu.matmul %28, %24, %cst {dimension_numbers = #tpu.dot_dimension_numbers<[1], [1], [0], [0], [0, 0, 1, 0], [], []>} : vector<8x128xf32>, vector<8x128xf32>, vector<8x8xf32> -> vector<8x8xf32>
      %c0_15 = arith.constant 0 : index
      %c0_16 = arith.constant 0 : index
      %30 = vector.load %arg11[%c0_15, %c0_16] : memref<8x1xf32, #tpu.memory_space<vmem>>, vector<8x1xf32>
      %cst_17 = arith.constant dense<0xFF800000> : vector<8xf32>
      %31 = vector.multi_reduction <maximumf>, %29, %cst_17 [1] : vector<8x8xf32> to vector<8xf32>
      %32 = vector.shape_cast %31 : vector<8xf32> to vector<8x1xf32>
      %33 = arith.maximumf %30, %32 : vector<8x1xf32>
      %34 = arith.subf %30, %33 : vector<8x1xf32>
      %35 = math.exp %34 : vector<8x1xf32>
      %36 = vector.broadcast %33 : vector<8x1xf32> to vector<8x8xf32>
      %37 = arith.subf %29, %36 : vector<8x8xf32>
      %38 = math.exp %37 : vector<8x8xf32>
      %c0_18 = arith.constant 0 : index
      %c0_19 = arith.constant 0 : index
      %39 = vector.load %arg12[%c0_18, %c0_19] : memref<8x1xf32, #tpu.memory_space<vmem>>, vector<8x1xf32>
      %40 = arith.mulf %35, %39 : vector<8x1xf32>
      %cst_20 = arith.constant dense<0.000000e+00> : vector<8xf32>
      %41 = vector.multi_reduction <add>, %38, %cst_20 [1] : vector<8x8xf32> to vector<8xf32>
      %42 = vector.shape_cast %41 : vector<8xf32> to vector<8x1xf32>
      %43 = arith.addf %40, %42 : vector<8x1xf32>
      %c0_21 = arith.constant 0 : index
      %c0_22 = arith.constant 0 : index
      %44 = vector.load %arg12[%c0_21, %c0_22] : memref<8x1xf32, #tpu.memory_space<vmem>>, vector<8x1xf32>
      tpu.vector_store %arg12[%c0_21, %c0_22], %43 {strides = array<i32>} : memref<8x1xf32, #tpu.memory_space<vmem>>, vector<8x1xf32>,
      %c0_23 = arith.constant 0 : index
      %c0_24 = arith.constant 0 : index
      %45 = vector.load %arg13[%c0_23, %c0_24] : memref<8x128xf32, #tpu.memory_space<vmem>>, vector<8x128xf32>
      %46 = vector.broadcast %35 : vector<8x1xf32> to vector<8x128xf32>
      %47 = arith.mulf %46, %45 : vector<8x128xf32>
      %cst_25 = arith.constant dense<0.000000e+00> : vector<8x128xf32>
      %48 = tpu.matmul %38, %27, %cst_25 {dimension_numbers = #tpu.dot_dimension_numbers<[1], [0], [0], [1], [0, 0, 1, 1], [], []>} : vector<8x8xf32>, vector<8x128xf32>, vector<8x128xf32> -> vector<8x128xf32>
      %49 = arith.addf %47, %48 : vector<8x128xf32>
      %c0_26 = arith.constant 0 : index
      %c0_27 = arith.constant 0 : index
      %50 = vector.load %arg13[%c0_26, %c0_27] : memref<8x128xf32, #tpu.memory_space<vmem>>, vector<8x128xf32>
      tpu.vector_store %arg13[%c0_26, %c0_27], %49 {strides = array<i32>} : memref<8x128xf32, #tpu.memory_space<vmem>>, vector<8x128xf32>,
      %c0_28 = arith.constant 0 : index
      %c0_29 = arith.constant 0 : index
      %51 = vector.load %arg11[%c0_28, %c0_29] : memref<8x1xf32, #tpu.memory_space<vmem>>, vector<8x1xf32>
      tpu.vector_store %arg11[%c0_28, %c0_29], %33 {strides = array<i32>} : memref<8x1xf32, #tpu.memory_space<vmem>>, vector<8x1xf32>,
    } else {
    }
    %17 = arith.extui %14 : i1 to i32
    %c0_i32_7 = arith.constant 0 : i32
    %18 = arith.cmpi ne, %17, %c0_i32_7 : i32
    scf.if %18 {
      %22 = arith.index_cast %arg2 : i32 to index
      %c0 = arith.constant 0 : index
      %c0_10 = arith.constant 0 : index
      %23 = vector.load %arg14[%22, %c0, %c0_10] : memref<1x8x128xf32, #tpu.memory_space<vmem>>, vector<1x8x128xf32>
      %24 = vector.shape_cast %23 : vector<1x8x128xf32> to vector<8x128xf32>
      %25 = arith.index_cast %arg2 : i32 to index
      %c0_11 = arith.constant 0 : index
      %c0_12 = arith.constant 0 : index
      %26 = vector.load %arg15[%25, %c0_11, %c0_12] : memref<1x8x128xf32, #tpu.memory_space<vmem>>, vector<1x8x128xf32>
      %27 = vector.shape_cast %26 : vector<1x8x128xf32> to vector<8x128xf32>
      %c0_13 = arith.constant 0 : index
      %c0_14 = arith.constant 0 : index
      %28 = vector.load %arg10[%c0_13, %c0_14] : memref<8x128xf32, #tpu.memory_space<vmem>>, vector<8x128xf32>
      %cst = arith.constant dense<0.000000e+00> : vector<8x8xf32>
      %29 = tpu.matmul %28, %24, %cst {dimension_numbers = #tpu.dot_dimension_numbers<[1], [1], [0], [0], [0, 0, 1, 0], [], []>} : vector<8x128xf32>, vector<8x128xf32>, vector<8x8xf32> -> vector<8x8xf32>
      %30 = tpu.iota {dimensions = array<i32: 0>} : vector<8x8xi32>
      %31 = vector.broadcast %0 : i32 to vector<8x8xi32>
      %32 = arith.addi %31, %30 : vector<8x8xi32>
      %33 = tpu.iota {dimensions = array<i32: 1>} : vector<8x8xi32>
      %34 = vector.broadcast %1 : i32 to vector<8x8xi32>
      %35 = arith.addi %34, %33 : vector<8x8xi32>
      %36 = arith.cmpi sle, %35, %32 : vector<8x8xi32>
      %cst_15 = arith.constant 0xFF800000 : f32
      %37 = vector.broadcast %cst_15 : f32 to vector<8x8xf32>
      %38 = arith.select %36, %29, %37 : vector<8x8xi1>, vector<8x8xf32>
      %c0_16 = arith.constant 0 : index
      %c0_17 = arith.constant 0 : index
      %39 = vector.load %arg11[%c0_16, %c0_17] : memref<8x1xf32, #tpu.memory_space<vmem>>, vector<8x1xf32>
      %cst_18 = arith.constant dense<0xFF800000> : vector<8xf32>
      %40 = vector.multi_reduction <maximumf>, %38, %cst_18 [1] : vector<8x8xf32> to vector<8xf32>
      %41 = vector.shape_cast %40 : vector<8xf32> to vector<8x1xf32>
      %42 = arith.maximumf %39, %41 : vector<8x1xf32>
      %43 = arith.subf %39, %42 : vector<8x1xf32>
      %44 = math.exp %43 : vector<8x1xf32>
      %45 = vector.broadcast %42 : vector<8x1xf32> to vector<8x8xf32>
      %46 = arith.subf %38, %45 : vector<8x8xf32>
      %47 = math.exp %46 : vector<8x8xf32>
      %c0_19 = arith.constant 0 : index
      %c0_20 = arith.constant 0 : index
      %48 = vector.load %arg12[%c0_19, %c0_20] : memref<8x1xf32, #tpu.memory_space<vmem>>, vector<8x1xf32>
      %49 = arith.mulf %44, %48 : vector<8x1xf32>
      %cst_21 = arith.constant dense<0.000000e+00> : vector<8xf32>
      %50 = vector.multi_reduction <add>, %47, %cst_21 [1] : vector<8x8xf32> to vector<8xf32>
      %51 = vector.shape_cast %50 : vector<8xf32> to vector<8x1xf32>
      %52 = arith.addf %49, %51 : vector<8x1xf32>
      %c0_22 = arith.constant 0 : index
      %c0_23 = arith.constant 0 : index
      %53 = vector.load %arg12[%c0_22, %c0_23] : memref<8x1xf32, #tpu.memory_space<vmem>>, vector<8x1xf32>
      tpu.vector_store %arg12[%c0_22, %c0_23], %52 {strides = array<i32>} : memref<8x1xf32, #tpu.memory_space<vmem>>, vector<8x1xf32>,
      %c0_24 = arith.constant 0 : index
      %c0_25 = arith.constant 0 : index
      %54 = vector.load %arg13[%c0_24, %c0_25] : memref<8x128xf32, #tpu.memory_space<vmem>>, vector<8x128xf32>
      %55 = vector.broadcast %44 : vector<8x1xf32> to vector<8x128xf32>
      %56 = arith.mulf %55, %54 : vector<8x128xf32>
      %cst_26 = arith.constant dense<0.000000e+00> : vector<8x128xf32>
      %57 = tpu.matmul %47, %27, %cst_26 {dimension_numbers = #tpu.dot_dimension_numbers<[1], [0], [0], [1], [0, 0, 1, 1], [], []>} : vector<8x8xf32>, vector<8x128xf32>, vector<8x128xf32> -> vector<8x128xf32>
      %58 = arith.addf %56, %57 : vector<8x128xf32>
      %c0_27 = arith.constant 0 : index
      %c0_28 = arith.constant 0 : index
      %59 = vector.load %arg13[%c0_27, %c0_28] : memref<8x128xf32, #tpu.memory_space<vmem>>, vector<8x128xf32>
      tpu.vector_store %arg13[%c0_27, %c0_28], %58 {strides = array<i32>} : memref<8x128xf32, #tpu.memory_space<vmem>>, vector<8x128xf32>,
      %c0_29 = arith.constant 0 : index
      %c0_30 = arith.constant 0 : index
      %60 = vector.load %arg11[%c0_29, %c0_30] : memref<8x1xf32, #tpu.memory_space<vmem>>, vector<8x1xf32>
      tpu.vector_store %arg11[%c0_29, %c0_30], %42 {strides = array<i32>} : memref<8x1xf32, #tpu.memory_space<vmem>>, vector<8x1xf32>,
    } else {
    }
    %c0_i32_8 = arith.constant 0 : i32
    %19 = arith.cmpi eq, %arg2, %c0_i32_8 : i32
    %20 = arith.extui %19 : i1 to i32
    %c0_i32_9 = arith.constant 0 : i32
    %21 = arith.cmpi ne, %20, %c0_i32_9 : i32
    scf.if %21 {
      %c0 = arith.constant 0 : index
      %c0_10 = arith.constant 0 : index
      %22 = vector.load %arg12[%c0, %c0_10] : memref<8x1xf32, #tpu.memory_space<vmem>>, vector<8x1xf32>
      %23 = tpu.reciprocal %22 {approx = true} : vector<8x1xf32> -> vector<8x1xf32>
      %c0_11 = arith.constant 0 : index
      %c0_12 = arith.constant 0 : index
      %24 = vector.load %arg13[%c0_11, %c0_12] : memref<8x128xf32, #tpu.memory_space<vmem>>, vector<8x128xf32>
      %25 = vector.broadcast %23 : vector<8x1xf32> to vector<8x128xf32>
      %26 = arith.mulf %24, %25 : vector<8x128xf32>
      %c0_13 = arith.constant 0 : index
      %c0_14 = arith.constant 0 : index
      %c0_15 = arith.constant 0 : index
      %27 = vector.load %arg9[%c0_13, %c0_14, %c0_15] : memref<1x8x128xf32, #tpu.memory_space<vmem>>, vector<1x8x128xf32>
      %28 = vector.shape_cast %27 : vector<1x8x128xf32> to vector<8x128xf32>
      %29 = vector.shape_cast %26 : vector<8x128xf32> to vector<1x8x128xf32>
      tpu.vector_store %arg9[%c0_13, %c0_14, %c0_15], %29 {strides = array<i32>} : memref<1x8x128xf32, #tpu.memory_space<vmem>>, vector<1x8x128xf32>,
    } else {
    }
    return
  }
  func.func @transform_0(%arg0: i32, %arg1: i32, %arg2: i32) -> (i32, i32, i32) {
    %c0_i32 = arith.constant 0 : i32
    %c0_i32_0 = arith.constant 0 : i32
    return %arg0, %arg1, %c0_i32 : i32, i32, i32
  }
  func.func @transform_1(%arg0: i32, %arg1: i32, %arg2: i32) -> (i32, i32, i32) {
    %c1_i32 = arith.constant 1 : i32
    %0 = arith.muli %arg1, %c1_i32 : i32
    %1 = arith.addi %arg2, %0 : i32
    %c0_i32 = arith.constant 0 : i32
    %2 = arith.minsi %1, %c0_i32 : i32
    %c0_i32_0 = arith.constant 0 : i32
    %c0_i32_1 = arith.constant 0 : i32
    return %arg0, %2, %c0_i32_0 : i32, i32, i32
  }
  func.func @transform_2(%arg0: i32, %arg1: i32, %arg2: i32) -> (i32, i32) {
    %c0_i32 = arith.constant 0 : i32
    %c0_i32_0 = arith.constant 0 : i32
    %c0_i32_1 = arith.constant 0 : i32
    return %c0_i32, %c0_i32_0 : i32, i32
  }
  func.func @transform_3(%arg0: i32, %arg1: i32, %arg2: i32) -> (i32, i32) {
    %c0_i32 = arith.constant 0 : i32
    %c0_i32_0 = arith.constant 0 : i32
    %c0_i32_1 = arith.constant 0 : i32
    return %c0_i32, %c0_i32_0 : i32, i32
  }
  func.func @transform_4(%arg0: i32, %arg1: i32, %arg2: i32) -> (i32, i32) {
    %c0_i32 = arith.constant 0 : i32
    %c0_i32_0 = arith.constant 0 : i32
    %c0_i32_1 = arith.constant 0 : i32
    return %c0_i32, %c0_i32_0 : i32, i32
  }
  func.func @transform_5(%arg0: i32, %arg1: i32, %arg2: i32) -> (i32, i32) {
    %c0_i32 = arith.constant 0 : i32
    %c0_i32_0 = arith.constant 0 : i32
    %c0_i32_1 = arith.constant 0 : i32
    return %c0_i32, %c0_i32_0 : i32, i32
  }
  func.func @transform_6(%arg0: i32, %arg1: i32, %arg2: i32) -> (i32, i32, i32) {
    %c0_i32 = arith.constant 0 : i32
    %c0_i32_0 = arith.constant 0 : i32
    return %arg0, %arg1, %c0_i32 : i32, i32, i32
  }
}

</mosaic_0001>

<bundles_post_ra>
// kernel: tpu_custom_call.1
= control target key start
LH: loop header
LB: loop body
LE: loop exit
PB: predicated region body
PF: predicated region fallthrough
CT: control target
= control target key end

     0   :  { %s1418_s0 = inlined_call_operand.hbm [shape: f32[2,8,32], index: 0, kind: input, shape index: {}]   ;;  %s1419_s1 = inlined_call_operand.hbm [shape: f32[2,8,32], index: 1, kind: input, shape index: {}]   ;;  %s1420_s2 = inlined_call_operand.hbm [shape: f32[32,128], index: 2, kind: input, shape index: {}]   ;;  %s1421_s3 = inlined_call_operand.vmem [shape: f32[1,128], index: 3, kind: input, shape index: {}]   ;;  %s1422_s4 = inlined_call_operand.hbm [shape: f32[32,256], index: 4, kind: input, shape index: {}]   ;;  %s1423_s5 = inlined_call_operand.vmem [shape: f32[1,256], index: 5, kind: input, shape index: {}]   ;;  %s1424_s6 = inlined_call_operand.hbm [shape: f32[2,8,128], index: 6, kind: output, shape index: {}]  }
   0x1   :  { %1429 = sst [smem:[#allocation27_spill]] %s1420_s2 }
   0x2   :  { %1430 = sst [smem:[#allocation28_spill]] %s1422_s4 }
   0x3   :  { %11 = vsyncpa [#allocation9], 0 }
   0x4   :  { %13 = vsyncpa [#allocation9 + $0x1], 0 }
   0x5   :  { %14 = vsyncpa [#allocation12], 0 }
   0x6   :  { %16 = vsyncpa [#allocation12 + $0x1], 0 }
   0x7   :  { %17 = vsyncpa [#allocation15], 0 }
   0x8   :  { %18 = vsyncpa [#allocation10], 0 }
   0x9   :  { %20 = vsyncpa [#allocation10 + $0x1], 0  ;;  %s1238_s21 = smov 0   ;;  %s1240_s22 = smov 0  }
   0xa   :  { %s1242_s23 = smov 0   ;;  %s1244_s24 = smov 0  }
   0xb   :  { %s1246_s25 = smov 0   ;;  %s1248_s26 = smov 0  }
   0xc LB: > { %1431 = sst [smem:[#allocation22_spill]] %s1180_s23  ;;  %s1269_s27 = sadd.s32 4294967295, %s1192_s26   ;;  %s1192_s26 = sphi %s1248_s26, %s26_s26   ;;  %s1188_s25 = sphi %s1246_s25, %s1447_s25   ;;  %s1184_s24 = sphi %s1244_s24, %s1446_s24   ;;  %s1180_s23 = sphi %s1242_s23, %s1445_s23   ;;  %s1176_s22 = sphi %s1240_s22, %s1449_s22   ;;  %s1172_s21 = sphi %s1238_s21, %s1448_s21  }
   0xd   : > { %1432 = sst [smem:[#allocation23_spill]] %s1188_s25  ;;  %p850_p0 = scmp.ge.s32.totalorder %s1192_s26, 1 }
   0xe   : > { %p68_p1 = scmp.eq.s32.totalorder %s1269_s27, 0  ;;  %p224_p2 = scmp.lt.s32.totalorder %s1192_s26, 3 }
   0xf   : > { %s1433_s2 = sld [smem:[#allocation27_spill]]  ;;  %s1194_s8 = smov [#allocation13]  }
  0x10   : > { %p1277_p3 = pnand %p850_p0, %p224_p2  ;;  %s237_s9 = sshll.u32 %s1194_s8, 4  ;;  %s238_s9 = int_to_ptr.vmem [resolvable:$true] %s237_s9 }
  0x11   : > { %p853_p6 = scmp.ge.s32.totalorder %s1192_s26, 2  ;;  %s1435_s4 = sld [smem:[#allocation28_spill]] }
  0x12   : > { %p887_p4 = pneg %p1277_p3  ;;  %s1195_s13 = smov 128  }
  0x13   : > { %s1196_s14 = smov 8   ;;  %s1197_s15 = smov [#allocation14]  }
  0x14   : > { %p888_p5 = pnand %p887_p4, %p68_p1  ;;  %s254_s16 = sshll.u32 %s1197_s15, 4  ;;  %s255_s16 = int_to_ptr.vmem [resolvable:$true] %s254_s16 }
  0x15   : > { %s235_s30 = sshll.u32 %s1433_s2, 4  ;;  %s1198_s17 = smov 256   ;;  %s236_s30 = int_to_ptr.hbm [resolvable:$true] %s235_s30 }
  0x16   : > { %890 = dma.hbm_to_vmem [thread:$0]  (!%p888_p5), %s236_s30, 512, %s238_s9, [#allocation12], %s1195_s13, %s1195_s13, %s1196_s14  }
  0x17   : > { %s252_s12 = sshll.u32 %s1435_s4, 4  ;;  %s1199_s18 = smov 16   ;;  %s253_s12 = int_to_ptr.hbm [resolvable:$true] %s252_s12 }
  0x18   : > { %893 = dma.hbm_to_vmem [thread:$0]  (!%p888_p5), %s253_s12, 1024, %s255_s16, [#allocation15], %s1198_s17, %s1198_s17, %s1199_s18  }
  0x19   : > { %s849_s19 = sadd.s32 4294967294, %s1192_s26   ;;  %s45_s20 = sadd.s32 1, %s1188_s25 }
  0x1a   : > { %p47_p7 = scmp.ge.s32.totalorder %s45_s20, 2  ;;  %s54_s28 = sadd.s32 1, %s1180_s23 }
  0x1b   : > { %p61_p8 = scmp.ne.s32.totalorder %s1180_s23, %s1176_s22  ;;  %p62_p9 = scmp.eq.s32.totalorder %s1192_s26, 0 }
  0x1c   : > { %s1451_s20 = smov (%p47_p7, %s45_s20), 0  ;;  %p67_p11 = scmp.ne.s32.totalorder %s1176_s22, %s1172_s21 }
  0x1d   : > { %1436 = sst [smem:[#allocation24_spill]] %s1451_s20  ;;  %p1297_p10 = por %p62_p9, %p61_p8 }
  0x1e   : > { %s49_s30 = ssub.s32 %s1188_s25, %s1451_s20  ;;  %p211_p12 = scmp.eq.s32.totalorder %s1269_s27, 1 }
  0x1f   : > { %p52_p13 = scmp.eq.s32.totalorder %s49_s30, 0  ;;  %p1308_p0 = por %p68_p1, %p67_p11 }
  0x20   : > { %p1312_p2 = por %p211_p12, %p61_p8  ;;  %p217_p4 = scmp.eq.s32.totalorder %s849_s19, 1 }
  0x21   : > { %s1317_s10 = scalar_select %p52_p13, %s1180_s23, %s54_s28  }
  0x22   : > { %p1319_p5 = por %p217_p4, %p67_p11  ;;  %p907_p7 = scmp.lt.s32.totalorder %s1192_s26, 2 }
  0x23   : > { %1440 = sst [smem:[#allocation25_spill]] %s1317_s10  ;;  %s271_s12 = sand.u32 1, %s1180_s23  }
  0x24   : > { %s1441_s11 = scalar_select %p1319_p5, 1, 0 }
  0x25   : > { %s855_s13 = sshll.u32 %s1188_s25, 3  ;;  %s854_s14 = sshll.u32 %s271_s12, 3 }
  0x26   : > { %1442 = sst [smem:[#allocation26_spill]] %s1441_s11  ;;  %s280_s17 = scalar_lea.hbm %s1418_s0, %s855_s13 }
  0x27   : > { %s282_s18 = sshll.u32 %s280_s17, 4  ;;  %s275_s30 = scalar_lea.vmem [#allocation8], %s854_s14  ;;  %s283_s18 = int_to_ptr.hbm [resolvable:$true] %s282_s18 }
  0x28   : > { %s284_s2 = sshll.u32 %s275_s30, 4  ;;  %p895_p8 = pnand %p907_p7, %p1297_p10  ;;  %s285_s2 = int_to_ptr.vmem [resolvable:$true] %s284_s2 }
  0x29   : > { %s303_s4 = scalar_lea.hbm %s1419_s1, %s855_s13  ;;  %s291_s20 = sand.u32 1, %s1192_s26  }
  0x2a   : > { %s272_s10 = scalar_lea.sflag [#allocation9], %s271_s12  ;;  %s305_s25 = sshll.u32 %s303_s4, 4  ;;  %s306_s25 = int_to_ptr.hbm [resolvable:$true] %s305_s25 }
  0x2b   : > { %897 = dma.hbm_to_vmem [thread:$0]  (!%p895_p8), %s283_s18, 128, %s285_s2, %s272_s10  }
  0x2c   : > { %s295_s23 = scalar_lea.vmem [#allocation11], %s854_s14  ;;  %s292_s15 = scalar_lea.sflag [#allocation12], %s291_s20 }
  0x2d   : > { %s307_s11 = sshll.u32 %s295_s23, 4  ;;  %316 = sbr.rel (%p1277_p3) target bundleno = 810 (0x32a), region = 44  ;;  %s308_s11 = int_to_ptr.vmem [resolvable:$true] %s307_s11 }
  0x2e   : > { %900 = dma.hbm_to_vmem [thread:$0]  (!%p895_p8), %s306_s25, 128, %s308_s11, %s292_s15  }
  0x2f   : > { %s1338_s29 = sand.u32 (!%p1277_p3), 1, %s1176_s22  }
  0x30   : > { %s1341_s13 = sshll.u32 (!%p1277_p3), %s1338_s29, 3  ;;  %s319_s2 = scalar_lea.sflag (!%p1277_p3), [#allocation9], %s1338_s29 }
  0x31   : > { %s322_s4 = scalar_lea.vmem (!%p1277_p3), [#allocation8], %s1341_s13 }
  0x32   : > { %1151 = dma.done.wait (%p1308_p0), %s319_s2, 128  }
  0x33   : > { %1153 = vsyncadd (%p1308_p0), %s319_s2, 4294967168  ;;  %s328_s23 = sand.u32 1, %s1269_s27   ;;  %s332_s7 = scalar_lea.vmem [#allocation11], %s1341_s13 }
  0x34   : > { %s329_s25 = scalar_lea.sflag [#allocation12], %s328_s23 }
  0x35   : > { %1155 = dma.done.wait (%p1308_p0), %s329_s25, 128  }
  0x36   : > { %1157 = vsyncadd (%p1308_p0), %s329_s25, 4294967168 }
  0x37   : > { %1159 = dma.done.wait (%p68_p1), [#allocation12], 512  }
  0x38   : > { %1161 = vsyncadd (%p68_p1), [#allocation12], 4294966784 }
  0x39   : > { %1163 = dma.done.wait (%p68_p1), [#allocation15], 1024  }
  0x3a   : > { %1165 = vsyncadd (%p68_p1), [#allocation15], 4294966272  ;;  %v457_v0 = vld [vmem:[#allocation13 + $0x18] sm:$0xff]  ;;  %v456_v1 = vld [vmem:[#allocation13 + $0x10] sm:$0xff]  ;;  %vm401_vm0 = vcmask 261120   ;;  %vm488_vm1 = vcmask 7168   ;;  %v612_v23 = vlaneseq }
  0x3b   : > { %478 = vmatpush.msra.mxu2 %v457_v0  ;;  %v393_v2 = vld [vmem:[#allocation14 + $0x30] sm:$0xff]  ;;  %v391_v3 = vld [vmem:[#allocation14 + $0x20] sm:$0xff]  ;;  %v455_v4 = vld [vmem:[#allocation13 + $0x8] sm:$0xff]  ;;  %v1200_v20 = vmov -inf   ;;  %vm623_vm3 = vcmask 64512   ;;  %v1201_v29 = vmov 0  }
  0x3c   : > { %417 = vmatpush.msra.mxu0 %v393_v2  ;;  %v389_v5 = vld [vmem:[#allocation14 + $0x10] sm:$0xff]  ;;  %v454_v6 = vld [vmem:[#allocation13] sm:$0xff]  ;;  %v394_v18 = vld [vmem:[#allocation14 + $0x38] sm:$0xff]  ;;  %489 = vst.msk [vmem:[#allocation3] sm:$0xff] %vm488_vm1, %v1200_v20  ;;  %v613_v24 = vshrl.u32 %v612_v23, 7  ;;  %v617_v25 = vand.u32 127, %v612_v23  ;;  %968 = vset.pattern.permute.xlu0 %v1201_v29 }
  0x3d   : > { %479 = vmatpush.msra.mxu2 %v456_v1  ;;  %v453_v7 = vld [vmem:[%s322_s4] sm:$0xff]  ;;  %v386_v9 = vld [vmem:[%s332_s7] sm:$0xff]  ;;  %437 = vmatpush.msra.mxu1 %v394_v18  ;;  %v1202_v30 = vmov 0.0   ;;  %s870_s11 = sshll.u32 %s1184_s24, 3  ;;  %s376_s17 = scalar_lea.vmem [#allocation16], %s1341_s13 }
  0x3e   : > { %418 = vmatpush.msra.mxu0 %v391_v3  ;;  %v387_v8 = vld [vmem:[#allocation14] sm:$0xff]  ;;  %v395_v10 = vld [vmem:[%s1423_s5] sm:$0x3]  ;;  %v392_v19 = vld [vmem:[#allocation14 + $0x28] sm:$0xff]  ;;  %vm620_vm2 = vcmp.le.s32.totalorder %v617_v25, %v613_v24  ;;  %969 = vset.pattern.permute.xlu1 %v1201_v29  ;;  %490 = vst.msk [vmem:[#allocation4] sm:$0xff] %vm488_vm1, %v1202_v30  ;;  %s705_s16 = scalar_lea.hbm %s1424_s6, %s870_s11  ;;  %s707_s18 = sshll.u32 %s376_s17, 4  ;;  %s708_s18 = int_to_ptr.vmem [resolvable:$true] %s707_s18 }
  0x3f   : > { %480 = vmatpush.msra.mxu2 %v455_v4  ;;  %v397_v11 = vperm.slane %v395_v10, 0  ;;  %v971_v14 = vld [vmem:[%s1421_s3] ss:$0 sm:$0xff]  ;;  %v390_v21 = vld [vmem:[#allocation14 + $0x18] sm:$0xff]  ;;  %438 = vmatpush.msra.mxu1 %v392_v19  ;;  %v388_v22 = vld [vmem:[#allocation14 + $0x8] sm:$0xff]  ;;  %v398_v35 = vperm.slane %v395_v10, 1 }
  0x40   : > { %419 = vmatpush.msra.mxu0 %v389_v5  ;;  %970 = vset.pattern.permute.xlu2 %v1201_v29  ;;  %s709_s30 = sshll.u32 %s705_s16, 4  ;;  %s694_s19 = scalar_lea.sflag [#allocation10], %s1338_s29  ;;  %s710_s30 = int_to_ptr.hbm [resolvable:$true] %s709_s30 }
  0x41   : > { %481 = vmatpush.msra.mxu2 %v454_v6  ;;  %439 = vmatpush.msra.mxu1 %v390_v21  ;;  %s1112_s28 = sshra.s32 %s710_s30, 4  ;;  %s1118_s13 = scalar_lea.hbm %s1424_s6, 16  ;;  %s1113_s28 = int_to_ptr.hbm [resolvable:$true] %s1112_s28 }
  0x42   : > { %866 = vmatmul.msk.f32.vlgmr.msra.gmra.mxu2 %vm401_vm0, %v453_v7  ;;  %420 = vmatpush.msra.mxu0 %v387_v8  ;;  %s1114_s24 = scalar_lea.hbm %s1113_s28, 8  ;;  %p1119_p10 = scmp.lt.s32.totalorder %s1113_s28, %s1424_s6 }
  0x43   : > { %864 = vmatmul.msk.f32.vlgmr.msra.gmra.mxu0 %vm401_vm0, %v386_v9  ;;  %440 = vmatpush.msra.mxu1 %v388_v22  ;;  %v622_v31 = vld [vmem:[#allocation3] sm:$0xff]  ;;  %p1115_p1 = scmp.ne.s32.totalorder %s1113_s28, %s1114_s24  ;;  %p1120_p11 = scmp.lt.s32.totalorder %s1118_s13, %s1114_s24 }
  0x44   : > { %865 = vmatmul.msk.f32.vlgmr.msra.gmra.mxu1 %vm401_vm0, %v386_v9 }
  0x45   : > { %v639_v45 = vld [vmem:[#allocation4] sm:$0xff]  ;;  %p1116_p3 = pnand %p1115_p1, %p1312_p2  ;;  %p1121_p12 = por %p1120_p11, %p1119_p10 }
  0x47   : > { %p1117_p9 = pneg %p1116_p3 }
  0x49   : > { %p1122_p13 = pnand %p1121_p12, %p1117_p9 }
  0xc0   : > { %v422_v12 = vpop.f32.mrf.mxu0 }
  0xc1   : > { %v423_v13 = vadd.f32 %v422_v12, %v397_v11  ;;  %v442_v36 = vpop.f32.mrf.mxu1 }
  0xc2   : > { %v443_v37 = vadd.f32 %v442_v36, %v398_v35 }
  0xc3   : > { %607 = vmatpush.xpose.msra.mxu3 %v423_v13 }
  0xc5   : > { %v483_v15 = vpop.f32.mrf.mxu2 }
  0xc6   : > { %v484_v16 = vadd.f32 %v971_v14, %v483_v15 }
  0xc7   : > { %672 = vmatpush.msrb.mxu3 %v443_v37 }
  0xc8   : > { %v486_v17 = vmul.f32 0.25, %v484_v16 }
  0xca   : > { %608 = vmatmul.f32.vlgmr.msra.gmra.mxu3 %v486_v17 }
 0x14d   : > { %v609_v26 = vpop.f32.mrf.mxu3 }
 0x14e   : > { %v621_v27 = vsel %vm620_vm2, %v609_v26, -inf }
 0x14f   : > { %v624_v28 = vsel %vm623_vm3, %v621_v27, -inf }
 0x150   : > { %625 = vmax.xlane.f32.xlu0 %v624_v28 }
 0x1c3   : > { %v626_v32 = vpop.xlane.xlu0 %625 }
 0x1c4   : > { %v627_v33 = vmax.f32 %v622_v31, %v626_v32 }
 0x1c6   : > { %v628_v34 = vsub.f32 %v622_v31, %v627_v33  ;;  %679 = vst.msk [vmem:[#allocation3] sm:$0xff] %vm488_vm1, %v627_v33  ;;  %633 = vperm.xlu0 %968, %v627_v33  }
 0x1c8   : > { %v629_v43 = vmul.f32 1.442695, %v628_v34 }
 0x238   : > { %v634_v38 = vpop.permute.xlu0 %633 }
 0x239   : > { %v636_v39 = vsub.f32 %v621_v27, %v634_v38 }
 0x23b   : > { %v637_v40 = vmul.f32 1.442695, %v636_v39 }
 0x23d   : > { %972 = vpow2.f32 %v637_v40 }
 0x23e   : > { %974 = vpow2.f32 %v629_v43 }
 0x243   : > { %v973_v41 = vpop.eup %972 }
 0x244   : > { %868 = vmatmul.msk.f32.vlgmr.msrb.gmra.mxu3 %vm623_vm3, %v973_v41  ;;  %v641_v42 = vsel %vm623_vm3, %v973_v41, 0.0  ;;  %v975_v44 = vpop.eup %974 }
 0x245   : > { %642 = vadd.xlane.f32.xlu1 %v641_v42  ;;  %v640_v46 = vmul.f32 %v975_v44, %v639_v45 }
 0x25e   : > { %650 = vperm.xlu1 %969, %v975_v44  }
 0x2b8   : > { %v643_v47 = vpop.xlane.xlu1 %642 }
 0x2b9   : > { %v644_v48 = vadd.f32 %v643_v47, %v640_v46 }
 0x2bb   : > { %646 = vst.msk [vmem:[#allocation4] sm:$0xff] %vm488_vm1, %v644_v48 }
 0x2c2   : > { %v683_v49 = vld [vmem:[#allocation4] sm:$0xff] }
 0x2c3   : > { %976 = vrcp.f32 %v683_v49 }
 0x2c7   : > { %v674_v53 = vpop.f32.mrf.mxu3 }
 0x2c9   : > { %v977_v50 = vpop.eup %976 }
 0x2ca   : > { %688 = vperm.xlu2 %970, %v977_v50  }
 0x2d0   : > { %v651_v51 = vpop.permute.xlu1 %650 }
 0x2d1   : > { %v653_v52 = vmul.f32 0.0, %v651_v51 }
 0x2d3   : > { %v677_v54 = vadd.f32 %v674_v53, %v653_v52 }
 0x324   : > { %v689_v55 = vpop.permute.xlu2 %688 }
 0x325   : > { %v691_v56 = vmul.f32 %v689_v55, %v677_v54 }
 0x327   : > { %692 = vst [vmem:[%s376_s17] sm:$0xff] %v691_v56 }
 0x328   : > { %1125 = shalt.err (!%p1122_p13)
}
 0x329   : > { %885 = dma.vmem_to_hbm [thread:$0]  (%p1312_p2), %s708_s18, 128, %s710_s30, %s694_s19  }
 0x32a PF: > { %s721_s25 = sand.u32 1, %s1172_s21   ;;  %p902_p0 = pnand %p853_p6, %p1319_p5 }
 0x32b   : > { %s722_s7 = scalar_lea.sflag [#allocation10], %s721_s25 }
 0x32c   : > { %p903_p4 = pneg %p902_p0 }
 0x32e   : > { %1167 = dma.done.wait (%p903_p4), %s722_s7, 128  }
 0x32f   : > { %1169 = vsyncadd (%p903_p4), %s722_s7, 4294967168  ;;  %s26_s26 = sadd.s32 1, %s1192_s26   ;;  %s1444_s27 = sld [smem:[#allocation22_spill]] }
 0x330   : > { %p23_p7 = scmp.ge.s32.totalorder %s26_s26, 4   ;;  %s1445_s23 = sld [smem:[#allocation25_spill]] }
 0x331   : > { %s1446_s24 = sld [smem:[#allocation23_spill]]  ;;  %s1448_s21 = smov %s1176_s22 }
 0x332   : > { %s1447_s25 = sld [smem:[#allocation24_spill]]  ;;  %25 = sbr.rel (!%p23_p7) target bundleno = 12 (0xc), region = 136 }
 0x335   : > { %s1449_s22 = smov %s1444_s27 }
 0x337   :  { %728 = vsyncpa [#allocation9], 1 }
 0x338   :  { %730 = vsyncpa [#allocation9 + $0x1], 1 }
 0x339   :  { %731 = vsyncpa [#allocation12], 1 }
 0x33a   :  { %733 = vsyncpa [#allocation12 + $0x1], 1 }
 0x33b   :  { %734 = vsyncpa [#allocation15], 1 }
 0x33c   :  { %735 = vsyncpa [#allocation10], 1 }
 0x33d   :  { %737 = vsyncpa [#allocation10 + $0x1], 1 }

</bundles_post_ra>
